<compile_context>
chip_gen: v5e
topology: v5e:2x2
jax: 0.10.0
libtpu: 0.0.40
codegen_flags: <defaults>
</compile_context>

<pallas_src>
from functools import partial

import jax
import jax.numpy as jnp
from jax.experimental import pallas as pl
from jax.experimental.pallas import tpu as pltpu

MAX_DISPARITY = 64.0
_LANE_TILE_PREFERRED = 32768     # lanes per grid step (multiple of 128)


def _choose_tile(total, preferred, quantum):
    """Largest multiple of `quantum` that divides `total` and is <= preferred.

    Falls back to the full extent, which is always a legal block dim
    (block dim == array dim), so non-128-divisible spatial sizes still work."""
    if total <= preferred:
        return total
    t = (preferred // quantum) * quantum
    while t >= quantum:
        if total % t == 0:
            return t
        t -= quantum
    return total


# -----------------------------------------------------------------------------
# Fused kernel: Normalize (images) + ValidDisparityMask (disparity, mask)
# -----------------------------------------------------------------------------
def _fused_kernel(max_disparity,
                  scale_ref, bias_ref, img_ref, disp_ref, mask_ref,
                  img_out_ref, disp_out_ref, mask_out_ref):
    # Normalize: one multiply-add per element, cast to f32 on-chip.
    img = img_ref[...].astype(jnp.float32)                     # (C, LT)
    img_out_ref[...] = img * scale_ref[...] + bias_ref[...]    # (C,1) broadcasts

    # Valid-disparity mask: 0 < d < max_disparity.
    d = disp_ref[...]                                           # (1, LT) f32
    valid = jnp.logical_and(d > 0.0, d < max_disparity)
    disp_out_ref[...] = jnp.where(valid, d, 0.0)
    mask_out_ref[...] = jnp.where(valid, mask_ref[...],
                                  jnp.zeros((), mask_ref.dtype))


def make_fused_normalize_and_valid_mask(mean, std, *,
                                        max_disparity=MAX_DISPARITY,
                                        lane_tile=_LANE_TILE_PREFERRED):
    """Returns transform(images, disparities, masks) -> same triple."""
    mean = jnp.asarray(mean, jnp.float32)
    std = jnp.asarray(std, jnp.float32)
    scale = (1.0 / (255.0 * std)).reshape(-1, 1)     # (C, 1)
    bias = (-mean / std).reshape(-1, 1)              # (C, 1)

    def transform(images, disparities, masks):
        N, C, H, W = images.shape
        assert C == scale.shape[0], "mean/std length must match channel count"
        HW = H * W
        LT = _choose_tile(HW, lane_tile, 128)
        num_lane_tiles = HW // LT

        # Lane-dense views (bitcast-style reshapes, no extra HBM pass).
        img3 = images.reshape(N, C, HW)
        disp3 = disparities.reshape(N, 1, HW).astype(jnp.float32)
        mask3 = masks.reshape(N, 1, HW)

        img_out, disp_out, mask_out = pl.pallas_call(
            partial(_fused_kernel, float(max_disparity)),
            out_shape=(
                jax.ShapeDtypeStruct((N, C, HW), jnp.float32),
                jax.ShapeDtypeStruct((N, 1, HW), jnp.float32),
                jax.ShapeDtypeStruct((N, 1, HW), mask3.dtype),
            ),
            grid=(N, num_lane_tiles),
            in_specs=[
                # Constant index_map -> fetched once, stays resident in VMEM.
                pl.BlockSpec((C, 1), lambda n, l: (0, 0)),            # scale
                pl.BlockSpec((C, 1), lambda n, l: (0, 0)),            # bias
                pl.BlockSpec((None, C, LT), lambda n, l: (n, 0, l)),  # images
                pl.BlockSpec((None, 1, LT), lambda n, l: (n, 0, l)),  # disparity
                pl.BlockSpec((None, 1, LT), lambda n, l: (n, 0, l)),  # mask
            ],
            out_specs=(
                pl.BlockSpec((None, C, LT), lambda n, l: (n, 0, l)),
                pl.BlockSpec((None, 1, LT), lambda n, l: (n, 0, l)),
                pl.BlockSpec((None, 1, LT), lambda n, l: (n, 0, l)),
            ),
            # disparity -> disp_out, mask -> mask_out updated in place.
            input_output_aliases={3: 1, 4: 2},
            compiler_params=pltpu.CompilerParams(
                dimension_semantics=("parallel", "parallel"),
                vmem_limit_bytes=32 * 1024 * 1024,
            ),
        )(scale, bias, img3, disp3, mask3)

        return (img_out.reshape(N, C, H, W),
                disp_out.reshape(N, 1, H, W),
                mask_out.reshape(N, 1, H, W))

    return transform


# -----------------------------------------------------------------------------
# Compose: identical semantics to the PyTorch module — thread the triple
# through each transform in order.
# -----------------------------------------------------------------------------
class Compose:
    def __init__(self, transforms):
        self.transforms = transforms

    def __call__(self, images, disparities, masks):
        for t in self.transforms:
            images, disparities, masks = t(images, disparities, masks)
        return images, disparities, masks


if __name__ == "__main__":
    key = jax.random.PRNGKey(0)
    k_img, k_disp = jax.random.split(key)

    N, C, H, W = 2, 3, 16, 16                  # stereo pair, RGB, small spatial
    # Integer pixel values carried as bf16 (exact for 0..255): half the HBM
    # read of f32, cast to f32 inside the kernel.
    images = jax.random.randint(k_img, (N, C, H, W), 0, 256,
                                dtype=jnp.int32).astype(jnp.bfloat16)
    disparities = jax.random.uniform(k_disp, (N, 1, H, W), jnp.float32, -8.0, 96.0)
    masks = jnp.ones((N, 1, H, W), jnp.bfloat16)          # 0/1 validity mask

    # Deterministic Normalize parameters (ImageNet stats).
    mean = jnp.array([0.485, 0.456, 0.406], jnp.float32)
    std = jnp.array([0.229, 0.224, 0.225], jnp.float32)

    compose = Compose([
        make_fused_normalize_and_valid_mask(mean, std),   # Normalize + ValidDisparityMask fused
    ])
    run = jax.jit(lambda i, d, m: compose(i, d, m))

    # Pure-JAX reference.
    img_f32 = images.astype(jnp.float32)
    ref_images = (img_f32 / 255.0 - mean[None, :, None, None]) / std[None, :, None, None]
    valid = jnp.logical_and(disparities > 0.0, disparities < MAX_DISPARITY)
    ref_disp = jnp.where(valid, disparities, 0.0)
    ref_masks = jnp.where(valid, masks, jnp.zeros((), masks.dtype))

    out_images, out_disp, out_masks = run(images, disparities, masks)
    jax.block_until_ready((out_images, out_disp, out_masks))

    assert out_images.shape == (N, C, H, W) and out_images.dtype == jnp.float32
    assert jnp.allclose(out_images, ref_images, atol=1e-5)
    assert jnp.allclose(out_disp, ref_disp)
    assert jnp.array_equal(out_masks, ref_masks)

    print("KERNEL_OK")
</pallas_src>

<mosaic_0001>
module attributes {stable_mosaic.version = 11 : i64} {
  func.func @_fused_kernel(%arg0: i32, %arg1: i32, %arg2: memref<3x1xf32, #tpu.memory_space<vmem>>, %arg3: memref<3x1xf32, #tpu.memory_space<vmem>>, %arg4: memref<1x3x256xbf16, #tpu.memory_space<vmem>>, %arg5: memref<1x1x256xf32, #tpu.memory_space<vmem>>, %arg6: memref<1x1x256xbf16, #tpu.memory_space<vmem>>, %arg7: memref<1x3x256xf32, #tpu.memory_space<vmem>>, %arg8: memref<1x1x256xf32, #tpu.memory_space<vmem>>, %arg9: memref<1x1x256xbf16, #tpu.memory_space<vmem>>) attributes {dimension_semantics = [#tpu.dimension_semantics<parallel>, #tpu.dimension_semantics<parallel>], iteration_bounds = array<i64: 2, 1>, scalar_prefetch = 0 : i64, scratch_operands = 0 : i64, tpu.core_type = #tpu.core_type<tc>, window_params = [{pipeline_mode = #tpu.pipeline_mode<synchronous>, transform_indices = @transform_0, window_bounds = array<i64: 3, 1>}, {pipeline_mode = #tpu.pipeline_mode<synchronous>, transform_indices = @transform_1, window_bounds = array<i64: 3, 1>}, {transform_indices = @transform_2, window_bounds = array<i64: 1, 3, 256>}, {transform_indices = @transform_3, window_bounds = array<i64: 1, 1, 256>}, {transform_indices = @transform_4, window_bounds = array<i64: 1, 1, 256>}, {transform_indices = @transform_5, window_bounds = array<i64: 1, 3, 256>}, {transform_indices = @transform_6, window_bounds = array<i64: 1, 1, 256>}, {transform_indices = @transform_7, window_bounds = array<i64: 1, 1, 256>}]} {
    %c0 = arith.constant 0 : index
    %c0_0 = arith.constant 0 : index
    %c0_1 = arith.constant 0 : index
    %0 = vector.load %arg4[%c0, %c0_0, %c0_1] : memref<1x3x256xbf16, #tpu.memory_space<vmem>>, vector<1x3x256xbf16>
    %1 = vector.shape_cast %0 : vector<1x3x256xbf16> to vector<3x256xbf16>
    %2 = arith.extf %1 : vector<3x256xbf16> to vector<3x256xf32>
    %c0_2 = arith.constant 0 : index
    %c0_3 = arith.constant 0 : index
    %3 = vector.load %arg2[%c0_2, %c0_3] : memref<3x1xf32, #tpu.memory_space<vmem>>, vector<3x1xf32>
    %4 = vector.broadcast %3 : vector<3x1xf32> to vector<3x256xf32>
    %5 = arith.mulf %2, %4 : vector<3x256xf32>
    %c0_4 = arith.constant 0 : index
    %c0_5 = arith.constant 0 : index
    %6 = vector.load %arg3[%c0_4, %c0_5] : memref<3x1xf32, #tpu.memory_space<vmem>>, vector<3x1xf32>
    %7 = vector.broadcast %6 : vector<3x1xf32> to vector<3x256xf32>
    %8 = arith.addf %5, %7 : vector<3x256xf32>
    %c0_6 = arith.constant 0 : index
    %c0_7 = arith.constant 0 : index
    %c0_8 = arith.constant 0 : index
    %9 = vector.load %arg7[%c0_6, %c0_7, %c0_8] : memref<1x3x256xf32, #tpu.memory_space<vmem>>, vector<1x3x256xf32>
    %10 = vector.shape_cast %9 : vector<1x3x256xf32> to vector<3x256xf32>
    %11 = vector.shape_cast %8 : vector<3x256xf32> to vector<1x3x256xf32>
    tpu.vector_store %arg7[%c0_6, %c0_7, %c0_8], %11 {strides = array<i32>} : memref<1x3x256xf32, #tpu.memory_space<vmem>>, vector<1x3x256xf32>,
    %c0_9 = arith.constant 0 : index
    %c0_10 = arith.constant 0 : index
    %c0_11 = arith.constant 0 : index
    %12 = vector.load %arg5[%c0_9, %c0_10, %c0_11] : memref<1x1x256xf32, #tpu.memory_space<vmem>>, vector<1x1x256xf32>
    %13 = vector.shape_cast %12 : vector<1x1x256xf32> to vector<1x256xf32>
    %cst = arith.constant 0.000000e+00 : f32
    %14 = vector.broadcast %cst : f32 to vector<1x256xf32>
    %15 = arith.cmpf ogt, %13, %14 : vector<1x256xf32>
    %cst_12 = arith.constant 6.400000e+01 : f32
    %16 = vector.broadcast %cst_12 : f32 to vector<1x256xf32>
    %17 = arith.cmpf olt, %13, %16 : vector<1x256xf32>
    %18 = arith.andi %15, %17 : vector<1x256xi1>
    %cst_13 = arith.constant 0.000000e+00 : f32
    %19 = vector.broadcast %cst_13 : f32 to vector<1x256xf32>
    %20 = arith.select %18, %13, %19 : vector<1x256xi1>, vector<1x256xf32>
    %c0_14 = arith.constant 0 : index
    %c0_15 = arith.constant 0 : index
    %c0_16 = arith.constant 0 : index
    %21 = vector.load %arg8[%c0_14, %c0_15, %c0_16] : memref<1x1x256xf32, #tpu.memory_space<vmem>>, vector<1x1x256xf32>
    %22 = vector.shape_cast %21 : vector<1x1x256xf32> to vector<1x256xf32>
    %23 = vector.shape_cast %20 : vector<1x256xf32> to vector<1x1x256xf32>
    tpu.vector_store %arg8[%c0_14, %c0_15, %c0_16], %23 {strides = array<i32>} : memref<1x1x256xf32, #tpu.memory_space<vmem>>, vector<1x1x256xf32>,
    %c0_17 = arith.constant 0 : index
    %c0_18 = arith.constant 0 : index
    %c0_19 = arith.constant 0 : index
    %24 = vector.load %arg6[%c0_17, %c0_18, %c0_19] : memref<1x1x256xbf16, #tpu.memory_space<vmem>>, vector<1x1x256xbf16>
    %25 = vector.shape_cast %24 : vector<1x1x256xbf16> to vector<1x256xbf16>
    %cst_20 = arith.constant 0.000000e+00 : bf16
    %26 = vector.broadcast %cst_20 : bf16 to vector<1x256xbf16>
    %27 = arith.select %18, %25, %26 : vector<1x256xi1>, vector<1x256xbf16>
    %c0_21 = arith.constant 0 : index
    %c0_22 = arith.constant 0 : index
    %c0_23 = arith.constant 0 : index
    %28 = vector.load %arg9[%c0_21, %c0_22, %c0_23] : memref<1x1x256xbf16, #tpu.memory_space<vmem>>, vector<1x1x256xbf16>
    %29 = vector.shape_cast %28 : vector<1x1x256xbf16> to vector<1x256xbf16>
    %30 = vector.shape_cast %27 : vector<1x256xbf16> to vector<1x1x256xbf16>
    tpu.vector_store %arg9[%c0_21, %c0_22, %c0_23], %30 {strides = array<i32>} : memref<1x1x256xbf16, #tpu.memory_space<vmem>>, vector<1x1x256xbf16>,
    return
  }
  func.func @transform_0(%arg0: i32, %arg1: i32) -> (i32, i32) {
    %c0_i32 = arith.constant 0 : i32
    %c0_i32_0 = arith.constant 0 : i32
    %c0_i32_1 = arith.constant 0 : i32
    return %c0_i32, %c0_i32_0 : i32, i32
  }
  func.func @transform_1(%arg0: i32, %arg1: i32) -> (i32, i32) {
    %c0_i32 = arith.constant 0 : i32
    %c0_i32_0 = arith.constant 0 : i32
    %c0_i32_1 = arith.constant 0 : i32
    return %c0_i32, %c0_i32_0 : i32, i32
  }
  func.func @transform_2(%arg0: i32, %arg1: i32) -> (i32, i32, i32) {
    %c0_i32 = arith.constant 0 : i32
    %c0_i32_0 = arith.constant 0 : i32
    return %arg0, %c0_i32, %arg1 : i32, i32, i32
  }
  func.func @transform_3(%arg0: i32, %arg1: i32) -> (i32, i32, i32) {
    %c0_i32 = arith.constant 0 : i32
    %c0_i32_0 = arith.constant 0 : i32
    return %arg0, %c0_i32, %arg1 : i32, i32, i32
  }
  func.func @transform_4(%arg0: i32, %arg1: i32) -> (i32, i32, i32) {
    %c0_i32 = arith.constant 0 : i32
    %c0_i32_0 = arith.constant 0 : i32
    return %arg0, %c0_i32, %arg1 : i32, i32, i32
  }
  func.func @transform_5(%arg0: i32, %arg1: i32) -> (i32, i32, i32) {
    %c0_i32 = arith.constant 0 : i32
    %c0_i32_0 = arith.constant 0 : i32
    return %arg0, %c0_i32, %arg1 : i32, i32, i32
  }
  func.func @transform_6(%arg0: i32, %arg1: i32) -> (i32, i32, i32) {
    %c0_i32 = arith.constant 0 : i32
    %c0_i32_0 = arith.constant 0 : i32
    return %arg0, %c0_i32, %arg1 : i32, i32, i32
  }
  func.func @transform_7(%arg0: i32, %arg1: i32) -> (i32, i32, i32) {
    %c0_i32 = arith.constant 0 : i32
    %c0_i32_0 = arith.constant 0 : i32
    return %arg0, %c0_i32, %arg1 : i32, i32, i32
  }
}

</mosaic_0001>

<bundles_post_ra>
// kernel: _lambda_.1
= control target key start
LH: loop header
LB: loop body
LE: loop exit
PB: predicated region body
PF: predicated region fallthrough
CT: control target
= control target key end

     0   :  { %s810_s24 = smov 0   ;;  %s812_s25 = smov 0   ;;  %s872_s0 = inlined_call_operand.vmem [shape: f32[3,1], index: 0, kind: input, shape index: {}]   ;;  %s873_s1 = inlined_call_operand.vmem [shape: f32[3,1], index: 1, kind: input, shape index: {}]   ;;  %s874_s2 = inlined_call_operand.vmem [shape: bf16[2,3,256], index: 2, kind: input, shape index: {}]   ;;  %s875_s3 = inlined_call_operand.vmem [shape: f32[2,1,256], index: 3, kind: input, shape index: {}, may-alias: {3,6}]   ;;  %s876_s4 = inlined_call_operand.vmem [shape: bf16[2,1,256], index: 4, kind: input, shape index: {}, may-alias: {4,7}]   ;;  %s877_s5 = inlined_call_operand.vmem [shape: f32[2,3,256], index: 5, kind: output, shape index: {0}]   ;;  %s878_s6 = inlined_call_operand.vmem [shape: f32[2,1,256], index: 6, kind: output, shape index: {1}, may-alias: {3,6}]   ;;  %s879_s7 = inlined_call_operand.vmem [shape: bf16[2,1,256], index: 7, kind: output, shape index: {2}, may-alias: {4,7}]  }
   0x1   :  { %s814_s26 = smov 0  }
   0x2 LB: > { %s30_s27 = sadd.s32 1, %s761_s25  ;;  %p700_p0 = scmp.ge.s32.totalorder %s765_s26, 1  ;;  %s765_s26 = sphi %s814_s26, %s18_s26   ;;  %s761_s25 = sphi %s812_s25, %s881_s25   ;;  %s757_s24 = sphi %s810_s24, %s880_s24  }
   0x3   : > { %p32_p1 = scmp.ge.s32.totalorder %s30_s27, 2  ;;  %p299_p2 = scmp.lt.s32.totalorder %s765_s26, 3 }
   0x5   : > { %s883_s27 = smov (%p32_p1, %s30_s27), 0  ;;  %p300_p3 = pnand %p700_p0, %p299_p2 }
   0x6   : > { %p372_p4 = scmp.lt.s32.totalorder (!%p300_p3), %s757_s24, 1 }
   0x7   : > { %303 = sbr.rel (%p300_p3) target bundleno = 142 (0x8e), region = 40 }
   0xc   : > { %v431_v0 = vld [vmem:[%s872_s0] sm:$0x7]  ;;  %v767_v1 = vmov 0   ;;  %s885_s24 = smov (!%p372_p4, %s757_s24), 1  ;;  %v768_v3 = vmov 857870592   ;;  %v459_v5 = vlaneseq }
   0xd   : > { %742 = vset.pattern.permute.xlu0 %v767_v1  ;;  %v442_v2 = vld [vmem:[%s873_s1] sm:$0x7]  ;;  %s837_s9 = sshll.u32 %s885_s24, 1  ;;  %v467_v4 = vunpack.c.l.s4 %v768_v3  ;;  %vm481_vm4 = vcmask 1040384   ;;  %vm482_vm5 = vsmask.f32 256  ;;  %v475_v11 = vunpack.c.l.b16 %v767_v1 }
   0xe   : > { %434 = vperm.xlu0 %742, %v431_v0   ;;  %s388_s12 = scalar_lea.vmem %s875_s3, %s837_s9  ;;  %vm461_vm2 = vcmp.lt.s32.totalorder %v459_v5, 256  ;;  %s416_s15 = scalar_lea.vmem %s878_s6, %s837_s9  ;;  %vm484_vm6 = vcmask 1041409   ;;  %vm485_vm7 = vsmask.f32 1280  ;;  %v476_v12 = vunpack.c.h.b16 %v767_v1  ;;  %vm483_vm8 = vmand %vm481_vm4, %vm482_vm5 }
   0xf   : > { %v468_v6 = vunpack.c.0.s8 %v467_v4  ;;  %v454_v7 = vld [vmem:[%s388_s12] sm:$0x3]  ;;  %s397_s18 = scalar_lea.vmem %s876_s4, %s837_s9  ;;  %vm486_vm10 = vmand %vm484_vm6, %vm485_vm7  ;;  %s425_s21 = scalar_lea.vmem %s879_s7, %s837_s9  ;;  %v769_v19 = vmov 839922192  }
  0x10   : > { %vm455_vm0 = vcmp.gt.f32.partialorder %v454_v7, 0.0  ;;  %vm456_vm1 = vcmp.lt.f32.partialorder %v454_v7, 64.0  ;;  %v464_v15 = vld [vmem:[%s397_s18] sm:$0x3]  ;;  %vm487_vm11 = vmor %vm486_vm10, %vm483_vm8  ;;  %s713_s22 = sshll.u32 %s885_s24, 2  ;;  %v437_v20 = vunpack.c.l.s4 %v769_v19  ;;  %s714_s30 = sshll.u32 %s885_s24, 3 }
  0x11   : > { %vm457_vm3 = vmand %vm455_vm0, %vm456_vm1  ;;  %v488_v16 = vld [vmem:[%s425_s21] sm:$0x3]  ;;  %s379_s29 = scalar_lea.vmem %s874_s2, %s713_s22  ;;  %s407_s10 = scalar_lea.vmem %s877_s5, %s714_s30 }
  0x12   : > { %v465_v8 = vsel %vm457_vm3, 1, %v767_v1  ;;  %v458_v9 = vsel %vm457_vm3, %v454_v7, 0.0  ;;  %v438_v22 = vunpack.c.0.s8 %v437_v20  ;;  %v429_v23 = vld [vmem:[%s379_s29] sm:$0xf] }
  0x13   : > { %v469_v10 = vperm.slane %v465_v8, %v468_v6  ;;  %463 = vst.msk [vmem:[%s416_s15] sm:$0x3] %vm461_vm2, %v458_v9  ;;  %v430_v24 = vunpack.c.l.bf16 %v429_v23 }
  0x15   : > { %vm470_vm9 = vcmp.ne.s32.totalorder %v469_v10, 0 }
  0x16   : > { %445 = vperm.xlu0 %742, %v442_v2   ;;  %v471_v13 = vsel %vm470_vm9, 1, %v767_v1 }
  0x17   : > { %v709_v14 = vunpack.i.l.s16 %v471_v13 }
  0x19   : > { %vm477_vm12 = vcmp.ne.s32.totalorder %v709_v14, %v475_v11  ;;  %vm478_vm13 = vcmp.ne.s32.totalorder %v709_v14, %v476_v12 }
  0x1a   : > { %vm479_vm14 = vmpackc.low %vm478_vm13, %vm477_vm12 }
  0x1b   : > { %v480_v17 = vsel %vm479_vm14, %v464_v15, 0 }
  0x1c   : > { %v489_v18 = vsel %vm487_vm11, %v480_v17, %v488_v16 }
  0x1d   : > { %490 = vst [vmem:[%s425_s21] sm:$0x3] %v489_v18 }
  0x80   : > { %v435_v21 = vpop.permute.xlu0 %434 }
  0x81   : > { %v439_v25 = vperm.slane %v435_v21, %v438_v22 }
  0x83   : > { %v441_v27 = vmul.f32 %v439_v25, %v430_v24 }
  0x88   : > { %v446_v26 = vpop.permute.xlu0 %445 }
  0x89   : > { %v450_v28 = vperm.slane %v446_v26, %v438_v22 }
  0x8b   : > { %v452_v29 = vadd.f32 %v450_v28, %v441_v27 }
  0x8d   : > { %453 = vst [vmem:[%s407_s10] sm:$0x77] %v452_v29 }
  0x8e PF: > { %s18_s26 = sadd.s32 1, %s765_s26   ;;  %s880_s24 = smov %s761_s25 }
  0x8f   : > { %p15_p5 = scmp.ge.s32.totalorder %s18_s26, 4   ;;  %s881_s25 = smov %s883_s27 }
  0x91   :  { %17 = sbr.rel (!%p15_p5) target bundleno = 2 (0x2), region = 100 }

</bundles_post_ra>
